<compile_context>
chip_gen: v7x
topology: tpu7x:2x2x1
jax: 0.10.0
libtpu: 0.0.40
codegen_flags: <defaults>
</compile_context>

<pallas_src>
import math

import jax
import jax.numpy as jnp
from jax.experimental import pallas as pl
from jax.experimental.pallas import tpu as pltpu

_SUBLANE = 8


def _round_up(x, m):
    return ((x + m - 1) // m) * m


def _ceil_div(a, b):
    return -(-a // b)


def _pick_tb(batch):
    """Rows per grid step: large (<=512), but >=2 steps when batch allows it."""
    tb = min(512, _round_up(batch, _SUBLANE))
    if batch > _SUBLANE and _ceil_div(batch, tb) < 2:
        tb = max(_SUBLANE, _round_up(_ceil_div(batch, 2), _SUBLANE))
    return tb


def prepare_params(params):
    """One-time weight preparation.  Call ONCE and cache; not per forward step.

    Weight matrices go to bf16 (MXU-native; halves the weight DMA + VMEM
    footprint); biases stay f32 for the elementwise path.  All matrices are
    expected pre-transposed to [in_features, out_features].
    """
    return dict(
        wa=params["wa_t"].astype(jnp.bfloat16),
        w=params["w_t"].astype(jnp.bfloat16),
        wf=params["wf_t"].astype(jnp.bfloat16),
        wp=params["wp_t"].astype(jnp.bfloat16),
        ba=params["ba"].astype(jnp.float32).reshape(1, -1),
        bf=params["bf"].astype(jnp.float32).reshape(1, -1),
        bp=params["bp"].astype(jnp.float32).reshape(1, -1),
    )


def _vqa_kernel(img_ref, q_ref, wa_ref, ba_ref, w_ref, wf_ref, bf_ref,
                wp_ref, bp_ref, out_ref):
    eps = 1e-12  # matches torch.nn.functional.normalize default eps

    # Upcast to f32 only for the normalize math (the sum-of-squares and
    # eps^2 = 1e-24 must stay in f32; bf16 would underflow / lose precision).
    x1 = img_ref[...].astype(jnp.float32)
    x2 = q_ref[...].astype(jnp.float32)

    ss1 = jnp.sum(x1 * x1, axis=1, keepdims=True)
    ss2 = jnp.sum(x2 * x2, axis=1, keepdims=True)
    # Both normalizations fused into ONE rsqrt (EUP slot) + one multiply:
    #   x1/max(||x1||,eps) * x2/max(||x2||,eps)
    #     == (x1*x2) * rsqrt(max(ss1,eps^2) * max(ss2,eps^2))
    scale = jax.lax.rsqrt(jnp.maximum(ss1, eps * eps) *
                          jnp.maximum(ss2, eps * eps))
    xvt_f32 = (x1 * x2) * scale
    xvt = xvt_f32.astype(jnp.bfloat16)          # single cast for the MXU

    # attentionblock: sigmoid-gated linear  y = x * sigmoid(x @ Wa + ba)
    gate = jax.nn.sigmoid(
        jnp.dot(xvt, wa_ref[...], preferred_element_type=jnp.float32)
        + ba_ref[...])
    xvt = (xvt_f32 * gate).astype(jnp.bfloat16)

    # relu(Xvt @ W^T)   (W pre-transposed on the host)
    xvt = jnp.maximum(
        jnp.dot(xvt, w_ref[...], preferred_element_type=jnp.float32),
        0.0).astype(jnp.bfloat16)

    # fusion_features: Linear(D, H) + ReLU
    xvt = jnp.maximum(
        jnp.dot(xvt, wf_ref[...], preferred_element_type=jnp.float32)
        + bf_ref[...], 0.0).astype(jnp.bfloat16)

    # answer_predictor: Linear(H, A)
    out_ref[...] = (
        jnp.dot(xvt, wp_ref[...], preferred_element_type=jnp.float32)
        + bp_ref[...]).astype(out_ref.dtype)


def vqa_mid_fusion(image_emb, question_emb, prepared):
    """Fused VqaMidFusionNetwork forward.  `prepared` = prepare_params(...)."""
    B, D = image_emb.shape
    H = prepared["bf"].shape[-1]
    A = prepared["bp"].shape[-1]

    TB = _pick_tb(B)
    Bp = _round_up(B, TB)
    if Bp != B:  # batch-only padding; feature dims keep their true size
        image_emb = jnp.pad(image_emb, ((0, Bp - B), (0, 0)))
        question_emb = jnp.pad(question_emb, ((0, Bp - B), (0, 0)))
    grid = (Bp // TB,)

    act_bytes = jnp.dtype(image_emb.dtype).itemsize
    weight_bytes = (2 * D * D + D * H + H * A) * 2 + (D + H + A) * 4
    stream_bytes = 2 * (2 * TB * D * act_bytes) + 2 * TB * A * 4
    cost = pl.CostEstimate(
        flops=2 * Bp * (2 * D * D + D * H + H * A),
        transcendentals=Bp * (D + 1),
        bytes_accessed=2 * Bp * D * act_bytes + Bp * A * 4 + weight_bytes,
    )

    def build(single_buffer_weights):
        res_kwargs = (dict(pipeline_mode=pl.Buffered(1))
                      if single_buffer_weights else {})

        def res_spec(shape):  # VMEM-resident across the batch grid
            return pl.BlockSpec(shape, lambda i: (0, 0), **res_kwargs)

        def act_spec(cols):
            return pl.BlockSpec((TB, cols), lambda i: (i, 0))

        wbuf = 1 if single_buffer_weights else 2
        vmem_limit = max(32 << 20,
                         int(1.25 * (wbuf * weight_bytes + stream_bytes))
                         + (1 << 20))

        out = pl.pallas_call(
            _vqa_kernel,
            out_shape=jax.ShapeDtypeStruct((Bp, A), jnp.float32),
            grid=grid,
            in_specs=[
                act_spec(D),          # image_emb tile
                act_spec(D),          # question_emb tile
                res_spec((D, D)),     # Wa^T
                res_spec((1, D)),     # ba
                res_spec((D, D)),     # W^T
                res_spec((D, H)),     # Wf^T
                res_spec((1, H)),     # bf
                res_spec((H, A)),     # Wp^T
                res_spec((1, A)),     # bp
            ],
            out_specs=pl.BlockSpec((TB, A), lambda i: (i, 0)),
            compiler_params=pltpu.CompilerParams(
                dimension_semantics=("parallel",),
                vmem_limit_bytes=vmem_limit),
            cost_estimate=cost,
        )(image_emb, question_emb,
          prepared["wa"], prepared["ba"], prepared["w"],
          prepared["wf"], prepared["bf"], prepared["wp"], prepared["bp"])
        return jax.block_until_ready(out)

    try:
        out_padded = build(single_buffer_weights=True)
    except Exception:
        # pl.Buffered(1) unsupported on this jax version -> default buffering.
        out_padded = build(single_buffer_weights=False)

    return out_padded[:B]


def _reference(image_emb, question_emb, prepared):
    """Pure-JAX reference with matching bf16-operand / f32-accum semantics."""
    eps = 1e-12

    def mm(a, w):
        return jnp.dot(a, w, preferred_element_type=jnp.float32)

    x1 = image_emb.astype(jnp.float32)
    x2 = question_emb.astype(jnp.float32)
    x1 = x1 / jnp.maximum(jnp.linalg.norm(x1, axis=1, keepdims=True), eps)
    x2 = x2 / jnp.maximum(jnp.linalg.norm(x2, axis=1, keepdims=True), eps)
    x = x1 * x2
    g = jax.nn.sigmoid(mm(x.astype(jnp.bfloat16), prepared["wa"]) + prepared["ba"])
    x = (x * g).astype(jnp.bfloat16)
    x = jnp.maximum(mm(x, prepared["w"]), 0.0).astype(jnp.bfloat16)
    x = jnp.maximum(mm(x, prepared["wf"]) + prepared["bf"], 0.0).astype(jnp.bfloat16)
    return mm(x, prepared["wp"]) + prepared["bp"]


if __name__ == "__main__":
    # Shapes implied by the module: D = n_dense * input_layer (square W).
    n_dense, input_layer = 4, 8
    D = n_dense * input_layer          # 32  fused-feature dim
    H = 64                             # fusion_features hidden dim
    A = 16                             # number of answers
    B = 8                              # batch
    w_s = 5.0                          # kaiming `a = sqrt(w_s)` slope arg

    key = jax.random.PRNGKey(0)
    ks = jax.random.split(key, 6)

    def kaiming_uniform(k, shape, fan_in, a):
        gain = math.sqrt(2.0 / (1.0 + a * a))
        bound = gain * math.sqrt(3.0 / fan_in)
        return jax.random.uniform(k, shape, jnp.float32, -bound, bound)

    image_emb = jax.random.normal(ks[0], (B, D), jnp.float32)
    question_emb = jax.random.normal(ks[1], (B, D), jnp.float32)

    # self.W  (kaiming_uniform_ with a = sqrt(w_s)); torch stores [out, in].
    W = kaiming_uniform(ks[2], (D, D), D, math.sqrt(w_s))
    # injected sub-module weights (nn.Linear-style kaiming with a = sqrt(5))
    Wa = kaiming_uniform(ks[3], (D, D), D, math.sqrt(5.0))
    Wf = kaiming_uniform(ks[4], (H, D), D, math.sqrt(5.0))
    Wp = kaiming_uniform(ks[5], (A, H), H, math.sqrt(5.0))
    ba = jnp.zeros((1, D), jnp.float32)
    bf = jnp.zeros((1, H), jnp.float32)
    bp = jnp.zeros((1, A), jnp.float32)

    params = dict(w_t=W.T, wa_t=Wa.T, ba=ba, wf_t=Wf.T, bf=bf, wp_t=Wp.T, bp=bp)

    # One-time weight prep (cache across calls; NOT part of the hot path).
    prepared = prepare_params(params)

    # Activations streamed in bf16 (cast once here, outside the per-call hot
    # path; at production batch sizes producers should emit bf16 directly).
    image_bf = image_emb.astype(jnp.bfloat16)
    question_bf = question_emb.astype(jnp.bfloat16)

    out = vqa_mid_fusion(image_bf, question_bf, prepared)
    jax.block_until_ready(out)

    ref = _reference(image_bf, question_bf, prepared)
    assert out.shape == (B, A)
    assert jnp.allclose(out, ref, rtol=1e-2, atol=1e-2), (
        float(jnp.max(jnp.abs(out - ref))))

    print("KERNEL_OK")
</pallas_src>

<mosaic_0001>
module attributes {stable_mosaic.version = 11 : i64} {
  func.func @_vqa_kernel(%arg0: i32, %arg1: memref<8x32xbf16, #tpu.memory_space<vmem>>, %arg2: memref<8x32xbf16, #tpu.memory_space<vmem>>, %arg3: memref<32x32xbf16, #tpu.memory_space<vmem>>, %arg4: memref<1x32xf32, #tpu.memory_space<vmem>>, %arg5: memref<32x32xbf16, #tpu.memory_space<vmem>>, %arg6: memref<32x64xbf16, #tpu.memory_space<vmem>>, %arg7: memref<1x64xf32, #tpu.memory_space<vmem>>, %arg8: memref<64x16xbf16, #tpu.memory_space<vmem>>, %arg9: memref<1x16xf32, #tpu.memory_space<vmem>>, %arg10: memref<8x16xf32, #tpu.memory_space<vmem>>) attributes {dimension_semantics = [#tpu.dimension_semantics<parallel>], iteration_bounds = array<i64: 1>, scalar_prefetch = 0 : i64, scratch_operands = 0 : i64, tpu.core_type = #tpu.core_type<tc>, window_params = [{transform_indices = @transform_0, window_bounds = array<i64: 8, 32>}, {transform_indices = @transform_1, window_bounds = array<i64: 8, 32>}, {pipeline_mode = #tpu.pipeline_mode<synchronous>, transform_indices = @transform_2, window_bounds = array<i64: 32, 32>}, {pipeline_mode = #tpu.pipeline_mode<synchronous>, transform_indices = @transform_3, window_bounds = array<i64: 1, 32>}, {pipeline_mode = #tpu.pipeline_mode<synchronous>, transform_indices = @transform_4, window_bounds = array<i64: 32, 32>}, {pipeline_mode = #tpu.pipeline_mode<synchronous>, transform_indices = @transform_5, window_bounds = array<i64: 32, 64>}, {pipeline_mode = #tpu.pipeline_mode<synchronous>, transform_indices = @transform_6, window_bounds = array<i64: 1, 64>}, {pipeline_mode = #tpu.pipeline_mode<synchronous>, transform_indices = @transform_7, window_bounds = array<i64: 64, 16>}, {pipeline_mode = #tpu.pipeline_mode<synchronous>, transform_indices = @transform_8, window_bounds = array<i64: 1, 16>}, {transform_indices = @transform_9, window_bounds = array<i64: 8, 16>}]} {
    %c0 = arith.constant 0 : index
    %c0_0 = arith.constant 0 : index
    %0 = vector.load %arg1[%c0, %c0_0] : memref<8x32xbf16, #tpu.memory_space<vmem>>, vector<8x32xbf16>
    %1 = arith.extf %0 : vector<8x32xbf16> to vector<8x32xf32>
    %c0_1 = arith.constant 0 : index
    %c0_2 = arith.constant 0 : index
    %2 = vector.load %arg2[%c0_1, %c0_2] : memref<8x32xbf16, #tpu.memory_space<vmem>>, vector<8x32xbf16>
    %3 = arith.extf %2 : vector<8x32xbf16> to vector<8x32xf32>
    %4 = arith.mulf %1, %1 : vector<8x32xf32>
    %cst = arith.constant dense<0.000000e+00> : vector<8xf32>
    %5 = vector.multi_reduction <add>, %4, %cst [1] : vector<8x32xf32> to vector<8xf32>
    %6 = vector.shape_cast %5 : vector<8xf32> to vector<8x1xf32>
    %7 = arith.mulf %3, %3 : vector<8x32xf32>
    %cst_3 = arith.constant dense<0.000000e+00> : vector<8xf32>
    %8 = vector.multi_reduction <add>, %7, %cst_3 [1] : vector<8x32xf32> to vector<8xf32>
    %9 = vector.shape_cast %8 : vector<8xf32> to vector<8x1xf32>
    %cst_4 = arith.constant 1.000000e-24 : f32
    %10 = vector.broadcast %cst_4 : f32 to vector<8x1xf32>
    %11 = arith.maximumf %6, %10 : vector<8x1xf32>
    %cst_5 = arith.constant 1.000000e-24 : f32
    %12 = vector.broadcast %cst_5 : f32 to vector<8x1xf32>
    %13 = arith.maximumf %9, %12 : vector<8x1xf32>
    %14 = arith.mulf %11, %13 : vector<8x1xf32>
    %15 = math.rsqrt %14 : vector<8x1xf32>
    %16 = arith.mulf %1, %3 : vector<8x32xf32>
    %17 = vector.broadcast %15 : vector<8x1xf32> to vector<8x32xf32>
    %18 = arith.mulf %16, %17 : vector<8x32xf32>
    %19 = arith.truncf %18 : vector<8x32xf32> to vector<8x32xbf16>
    %c0_6 = arith.constant 0 : index
    %c0_7 = arith.constant 0 : index
    %20 = vector.load %arg3[%c0_6, %c0_7] : memref<32x32xbf16, #tpu.memory_space<vmem>>, vector<32x32xbf16>
    %cst_8 = arith.constant dense<0.000000e+00> : vector<8x32xf32>
    %21 = tpu.matmul %19, %20, %cst_8 {dimension_numbers = #tpu.dot_dimension_numbers<[1], [0], [0], [1], [0, 0, 1, 1], [], []>} : vector<8x32xbf16>, vector<32x32xbf16>, vector<8x32xf32> -> vector<8x32xf32>
    %c0_9 = arith.constant 0 : index
    %c0_10 = arith.constant 0 : index
    %22 = vector.load %arg4[%c0_9, %c0_10] : memref<1x32xf32, #tpu.memory_space<vmem>>, vector<1x32xf32>
    %23 = vector.broadcast %22 : vector<1x32xf32> to vector<8x32xf32>
    %24 = arith.addf %21, %23 : vector<8x32xf32>
    %25 = arith.negf %24 : vector<8x32xf32>
    %26 = math.exp %25 : vector<8x32xf32>
    %cst_11 = arith.constant 1.000000e+00 : f32
    %27 = vector.broadcast %cst_11 : f32 to vector<8x32xf32>
    %28 = arith.addf %27, %26 : vector<8x32xf32>
    %29 = arith.divf %27, %28 : vector<8x32xf32>
    %30 = arith.mulf %18, %29 : vector<8x32xf32>
    %31 = arith.truncf %30 : vector<8x32xf32> to vector<8x32xbf16>
    %c0_12 = arith.constant 0 : index
    %c0_13 = arith.constant 0 : index
    %32 = vector.load %arg5[%c0_12, %c0_13] : memref<32x32xbf16, #tpu.memory_space<vmem>>, vector<32x32xbf16>
    %cst_14 = arith.constant dense<0.000000e+00> : vector<8x32xf32>
    %33 = tpu.matmul %31, %32, %cst_14 {dimension_numbers = #tpu.dot_dimension_numbers<[1], [0], [0], [1], [0, 0, 1, 1], [], []>} : vector<8x32xbf16>, vector<32x32xbf16>, vector<8x32xf32> -> vector<8x32xf32>
    %cst_15 = arith.constant 0.000000e+00 : f32
    %34 = vector.broadcast %cst_15 : f32 to vector<8x32xf32>
    %35 = arith.maximumf %33, %34 : vector<8x32xf32>
    %36 = arith.truncf %35 : vector<8x32xf32> to vector<8x32xbf16>
    %c0_16 = arith.constant 0 : index
    %c0_17 = arith.constant 0 : index
    %37 = vector.load %arg6[%c0_16, %c0_17] : memref<32x64xbf16, #tpu.memory_space<vmem>>, vector<32x64xbf16>
    %cst_18 = arith.constant dense<0.000000e+00> : vector<8x64xf32>
    %38 = tpu.matmul %36, %37, %cst_18 {dimension_numbers = #tpu.dot_dimension_numbers<[1], [0], [0], [1], [0, 0, 1, 1], [], []>} : vector<8x32xbf16>, vector<32x64xbf16>, vector<8x64xf32> -> vector<8x64xf32>
    %c0_19 = arith.constant 0 : index
    %c0_20 = arith.constant 0 : index
    %39 = vector.load %arg7[%c0_19, %c0_20] : memref<1x64xf32, #tpu.memory_space<vmem>>, vector<1x64xf32>
    %40 = vector.broadcast %39 : vector<1x64xf32> to vector<8x64xf32>
    %41 = arith.addf %38, %40 : vector<8x64xf32>
    %cst_21 = arith.constant 0.000000e+00 : f32
    %42 = vector.broadcast %cst_21 : f32 to vector<8x64xf32>
    %43 = arith.maximumf %41, %42 : vector<8x64xf32>
    %44 = arith.truncf %43 : vector<8x64xf32> to vector<8x64xbf16>
    %c0_22 = arith.constant 0 : index
    %c0_23 = arith.constant 0 : index
    %45 = vector.load %arg8[%c0_22, %c0_23] : memref<64x16xbf16, #tpu.memory_space<vmem>>, vector<64x16xbf16>
    %cst_24 = arith.constant dense<0.000000e+00> : vector<8x16xf32>
    %46 = tpu.matmul %44, %45, %cst_24 {dimension_numbers = #tpu.dot_dimension_numbers<[1], [0], [0], [1], [0, 0, 1, 1], [], []>} : vector<8x64xbf16>, vector<64x16xbf16>, vector<8x16xf32> -> vector<8x16xf32>
    %c0_25 = arith.constant 0 : index
    %c0_26 = arith.constant 0 : index
    %47 = vector.load %arg9[%c0_25, %c0_26] : memref<1x16xf32, #tpu.memory_space<vmem>>, vector<1x16xf32>
    %48 = vector.broadcast %47 : vector<1x16xf32> to vector<8x16xf32>
    %49 = arith.addf %46, %48 : vector<8x16xf32>
    %c0_27 = arith.constant 0 : index
    %c0_28 = arith.constant 0 : index
    %50 = vector.load %arg10[%c0_27, %c0_28] : memref<8x16xf32, #tpu.memory_space<vmem>>, vector<8x16xf32>
    tpu.vector_store %arg10[%c0_27, %c0_28], %49 {strides = array<i32>} : memref<8x16xf32, #tpu.memory_space<vmem>>, vector<8x16xf32>,
    return
  }
  func.func @transform_0(%arg0: i32) -> (i32, i32) {
    %c0_i32 = arith.constant 0 : i32
    %c0_i32_0 = arith.constant 0 : i32
    return %arg0, %c0_i32 : i32, i32
  }
  func.func @transform_1(%arg0: i32) -> (i32, i32) {
    %c0_i32 = arith.constant 0 : i32
    %c0_i32_0 = arith.constant 0 : i32
    return %arg0, %c0_i32 : i32, i32
  }
  func.func @transform_2(%arg0: i32) -> (i32, i32) {
    %c0_i32 = arith.constant 0 : i32
    %c0_i32_0 = arith.constant 0 : i32
    %c0_i32_1 = arith.constant 0 : i32
    return %c0_i32, %c0_i32_0 : i32, i32
  }
  func.func @transform_3(%arg0: i32) -> (i32, i32) {
    %c0_i32 = arith.constant 0 : i32
    %c0_i32_0 = arith.constant 0 : i32
    %c0_i32_1 = arith.constant 0 : i32
    return %c0_i32, %c0_i32_0 : i32, i32
  }
  func.func @transform_4(%arg0: i32) -> (i32, i32) {
    %c0_i32 = arith.constant 0 : i32
    %c0_i32_0 = arith.constant 0 : i32
    %c0_i32_1 = arith.constant 0 : i32
    return %c0_i32, %c0_i32_0 : i32, i32
  }
  func.func @transform_5(%arg0: i32) -> (i32, i32) {
    %c0_i32 = arith.constant 0 : i32
    %c0_i32_0 = arith.constant 0 : i32
    %c0_i32_1 = arith.constant 0 : i32
    return %c0_i32, %c0_i32_0 : i32, i32
  }
  func.func @transform_6(%arg0: i32) -> (i32, i32) {
    %c0_i32 = arith.constant 0 : i32
    %c0_i32_0 = arith.constant 0 : i32
    %c0_i32_1 = arith.constant 0 : i32
    return %c0_i32, %c0_i32_0 : i32, i32
  }
  func.func @transform_7(%arg0: i32) -> (i32, i32) {
    %c0_i32 = arith.constant 0 : i32
    %c0_i32_0 = arith.constant 0 : i32
    %c0_i32_1 = arith.constant 0 : i32
    return %c0_i32, %c0_i32_0 : i32, i32
  }
  func.func @transform_8(%arg0: i32) -> (i32, i32) {
    %c0_i32 = arith.constant 0 : i32
    %c0_i32_0 = arith.constant 0 : i32
    %c0_i32_1 = arith.constant 0 : i32
    return %c0_i32, %c0_i32_0 : i32, i32
  }
  func.func @transform_9(%arg0: i32) -> (i32, i32) {
    %c0_i32 = arith.constant 0 : i32
    %c0_i32_0 = arith.constant 0 : i32
    return %arg0, %c0_i32 : i32, i32
  }
}

module attributes {stable_mosaic.version = 11 : i64} {
  func.func @_vqa_kernel(%arg0: i32, %arg1: memref<8x32xbf16, #tpu.memory_space<vmem>>, %arg2: memref<8x32xbf16, #tpu.memory_space<vmem>>, %arg3: memref<32x32xbf16, #tpu.memory_space<vmem>>, %arg4: memref<1x32xf32, #tpu.memory_space<vmem>>, %arg5: memref<32x32xbf16, #tpu.memory_space<vmem>>, %arg6: memref<32x64xbf16, #tpu.memory_space<vmem>>, %arg7: memref<1x64xf32, #tpu.memory_space<vmem>>, %arg8: memref<64x16xbf16, #tpu.memory_space<vmem>>, %arg9: memref<1x16xf32, #tpu.memory_space<vmem>>, %arg10: memref<8x16xf32, #tpu.memory_space<vmem>>) attributes {dimension_semantics = [#tpu.dimension_semantics<parallel>], iteration_bounds = array<i64: 1>, scalar_prefetch = 0 : i64, scratch_operands = 0 : i64, tpu.core_type = #tpu.core_type<tc>, window_params = [{transform_indices = @transform_0, window_bounds = array<i64: 8, 32>}, {transform_indices = @transform_1, window_bounds = array<i64: 8, 32>}, {pipeline_mode = #tpu.pipeline_mode<synchronous>, transform_indices = @transform_2, window_bounds = array<i64: 32, 32>}, {pipeline_mode = #tpu.pipeline_mode<synchronous>, transform_indices = @transform_3, window_bounds = array<i64: 1, 32>}, {pipeline_mode = #tpu.pipeline_mode<synchronous>, transform_indices = @transform_4, window_bounds = array<i64: 32, 32>}, {pipeline_mode = #tpu.pipeline_mode<synchronous>, transform_indices = @transform_5, window_bounds = array<i64: 32, 64>}, {pipeline_mode = #tpu.pipeline_mode<synchronous>, transform_indices = @transform_6, window_bounds = array<i64: 1, 64>}, {pipeline_mode = #tpu.pipeline_mode<synchronous>, transform_indices = @transform_7, window_bounds = array<i64: 64, 16>}, {pipeline_mode = #tpu.pipeline_mode<synchronous>, transform_indices = @transform_8, window_bounds = array<i64: 1, 16>}, {transform_indices = @transform_9, window_bounds = array<i64: 8, 16>}]} {
    %c0 = arith.constant 0 : index
    %c0_0 = arith.constant 0 : index
    %0 = vector.load %arg1[%c0, %c0_0] : memref<8x32xbf16, #tpu.memory_space<vmem>>, vector<8x32xbf16>
    %1 = arith.extf %0 : vector<8x32xbf16> to vector<8x32xf32>
    %c0_1 = arith.constant 0 : index
    %c0_2 = arith.constant 0 : index
    %2 = vector.load %arg2[%c0_1, %c0_2] : memref<8x32xbf16, #tpu.memory_space<vmem>>, vector<8x32xbf16>
    %3 = arith.extf %2 : vector<8x32xbf16> to vector<8x32xf32>
    %4 = arith.mulf %1, %1 : vector<8x32xf32>
    %cst = arith.constant dense<0.000000e+00> : vector<8xf32>
    %5 = vector.multi_reduction <add>, %4, %cst [1] : vector<8x32xf32> to vector<8xf32>
    %6 = vector.shape_cast %5 : vector<8xf32> to vector<8x1xf32>
    %7 = arith.mulf %3, %3 : vector<8x32xf32>
    %cst_3 = arith.constant dense<0.000000e+00> : vector<8xf32>
    %8 = vector.multi_reduction <add>, %7, %cst_3 [1] : vector<8x32xf32> to vector<8xf32>
    %9 = vector.shape_cast %8 : vector<8xf32> to vector<8x1xf32>
    %cst_4 = arith.constant 1.000000e-24 : f32
    %10 = vector.broadcast %cst_4 : f32 to vector<8x1xf32>
    %11 = arith.maximumf %6, %10 : vector<8x1xf32>
    %cst_5 = arith.constant 1.000000e-24 : f32
    %12 = vector.broadcast %cst_5 : f32 to vector<8x1xf32>
    %13 = arith.maximumf %9, %12 : vector<8x1xf32>
    %14 = arith.mulf %11, %13 : vector<8x1xf32>
    %15 = math.rsqrt %14 : vector<8x1xf32>
    %16 = arith.mulf %1, %3 : vector<8x32xf32>
    %17 = vector.broadcast %15 : vector<8x1xf32> to vector<8x32xf32>
    %18 = arith.mulf %16, %17 : vector<8x32xf32>
    %19 = arith.truncf %18 : vector<8x32xf32> to vector<8x32xbf16>
    %c0_6 = arith.constant 0 : index
    %c0_7 = arith.constant 0 : index
    %20 = vector.load %arg3[%c0_6, %c0_7] : memref<32x32xbf16, #tpu.memory_space<vmem>>, vector<32x32xbf16>
    %cst_8 = arith.constant dense<0.000000e+00> : vector<8x32xf32>
    %21 = tpu.matmul %19, %20, %cst_8 {dimension_numbers = #tpu.dot_dimension_numbers<[1], [0], [0], [1], [0, 0, 1, 1], [], []>} : vector<8x32xbf16>, vector<32x32xbf16>, vector<8x32xf32> -> vector<8x32xf32>
    %c0_9 = arith.constant 0 : index
    %c0_10 = arith.constant 0 : index
    %22 = vector.load %arg4[%c0_9, %c0_10] : memref<1x32xf32, #tpu.memory_space<vmem>>, vector<1x32xf32>
    %23 = vector.broadcast %22 : vector<1x32xf32> to vector<8x32xf32>
    %24 = arith.addf %21, %23 : vector<8x32xf32>
    %25 = arith.negf %24 : vector<8x32xf32>
    %26 = math.exp %25 : vector<8x32xf32>
    %cst_11 = arith.constant 1.000000e+00 : f32
    %27 = vector.broadcast %cst_11 : f32 to vector<8x32xf32>
    %28 = arith.addf %27, %26 : vector<8x32xf32>
    %29 = arith.divf %27, %28 : vector<8x32xf32>
    %30 = arith.mulf %18, %29 : vector<8x32xf32>
    %31 = arith.truncf %30 : vector<8x32xf32> to vector<8x32xbf16>
    %c0_12 = arith.constant 0 : index
    %c0_13 = arith.constant 0 : index
    %32 = vector.load %arg5[%c0_12, %c0_13] : memref<32x32xbf16, #tpu.memory_space<vmem>>, vector<32x32xbf16>
    %cst_14 = arith.constant dense<0.000000e+00> : vector<8x32xf32>
    %33 = tpu.matmul %31, %32, %cst_14 {dimension_numbers = #tpu.dot_dimension_numbers<[1], [0], [0], [1], [0, 0, 1, 1], [], []>} : vector<8x32xbf16>, vector<32x32xbf16>, vector<8x32xf32> -> vector<8x32xf32>
    %cst_15 = arith.constant 0.000000e+00 : f32
    %34 = vector.broadcast %cst_15 : f32 to vector<8x32xf32>
    %35 = arith.maximumf %33, %34 : vector<8x32xf32>
    %36 = arith.truncf %35 : vector<8x32xf32> to vector<8x32xbf16>
    %c0_16 = arith.constant 0 : index
    %c0_17 = arith.constant 0 : index
    %37 = vector.load %arg6[%c0_16, %c0_17] : memref<32x64xbf16, #tpu.memory_space<vmem>>, vector<32x64xbf16>
    %cst_18 = arith.constant dense<0.000000e+00> : vector<8x64xf32>
    %38 = tpu.matmul %36, %37, %cst_18 {dimension_numbers = #tpu.dot_dimension_numbers<[1], [0], [0], [1], [0, 0, 1, 1], [], []>} : vector<8x32xbf16>, vector<32x64xbf16>, vector<8x64xf32> -> vector<8x64xf32>
    %c0_19 = arith.constant 0 : index
    %c0_20 = arith.constant 0 : index
    %39 = vector.load %arg7[%c0_19, %c0_20] : memref<1x64xf32, #tpu.memory_space<vmem>>, vector<1x64xf32>
    %40 = vector.broadcast %39 : vector<1x64xf32> to vector<8x64xf32>
    %41 = arith.addf %38, %40 : vector<8x64xf32>
    %cst_21 = arith.constant 0.000000e+00 : f32
    %42 = vector.broadcast %cst_21 : f32 to vector<8x64xf32>
    %43 = arith.maximumf %41, %42 : vector<8x64xf32>
    %44 = arith.truncf %43 : vector<8x64xf32> to vector<8x64xbf16>
    %c0_22 = arith.constant 0 : index
    %c0_23 = arith.constant 0 : index
    %45 = vector.load %arg8[%c0_22, %c0_23] : memref<64x16xbf16, #tpu.memory_space<vmem>>, vector<64x16xbf16>
    %cst_24 = arith.constant dense<0.000000e+00> : vector<8x16xf32>
    %46 = tpu.matmul %44, %45, %cst_24 {dimension_numbers = #tpu.dot_dimension_numbers<[1], [0], [0], [1], [0, 0, 1, 1], [], []>} : vector<8x64xbf16>, vector<64x16xbf16>, vector<8x16xf32> -> vector<8x16xf32>
    %c0_25 = arith.constant 0 : index
    %c0_26 = arith.constant 0 : index
    %47 = vector.load %arg9[%c0_25, %c0_26] : memref<1x16xf32, #tpu.memory_space<vmem>>, vector<1x16xf32>
    %48 = vector.broadcast %47 : vector<1x16xf32> to vector<8x16xf32>
    %49 = arith.addf %46, %48 : vector<8x16xf32>
    %c0_27 = arith.constant 0 : index
    %c0_28 = arith.constant 0 : index
    %50 = vector.load %arg10[%c0_27, %c0_28] : memref<8x16xf32, #tpu.memory_space<vmem>>, vector<8x16xf32>
    tpu.vector_store %arg10[%c0_27, %c0_28], %49 {strides = array<i32>} : memref<8x16xf32, #tpu.memory_space<vmem>>, vector<8x16xf32>,
    return
  }
  func.func @transform_0(%arg0: i32) -> (i32, i32) {
    %c0_i32 = arith.constant 0 : i32
    %c0_i32_0 = arith.constant 0 : i32
    return %arg0, %c0_i32 : i32, i32
  }
  func.func @transform_1(%arg0: i32) -> (i32, i32) {
    %c0_i32 = arith.constant 0 : i32
    %c0_i32_0 = arith.constant 0 : i32
    return %arg0, %c0_i32 : i32, i32
  }
  func.func @transform_2(%arg0: i32) -> (i32, i32) {
    %c0_i32 = arith.constant 0 : i32
    %c0_i32_0 = arith.constant 0 : i32
    %c0_i32_1 = arith.constant 0 : i32
    return %c0_i32, %c0_i32_0 : i32, i32
  }
  func.func @transform_3(%arg0: i32) -> (i32, i32) {
    %c0_i32 = arith.constant 0 : i32
    %c0_i32_0 = arith.constant 0 : i32
    %c0_i32_1 = arith.constant 0 : i32
    return %c0_i32, %c0_i32_0 : i32, i32
  }
  func.func @transform_4(%arg0: i32) -> (i32, i32) {
    %c0_i32 = arith.constant 0 : i32
    %c0_i32_0 = arith.constant 0 : i32
    %c0_i32_1 = arith.constant 0 : i32
    return %c0_i32, %c0_i32_0 : i32, i32
  }
  func.func @transform_5(%arg0: i32) -> (i32, i32) {
    %c0_i32 = arith.constant 0 : i32
    %c0_i32_0 = arith.constant 0 : i32
    %c0_i32_1 = arith.constant 0 : i32
    return %c0_i32, %c0_i32_0 : i32, i32
  }
  func.func @transform_6(%arg0: i32) -> (i32, i32) {
    %c0_i32 = arith.constant 0 : i32
    %c0_i32_0 = arith.constant 0 : i32
    %c0_i32_1 = arith.constant 0 : i32
    return %c0_i32, %c0_i32_0 : i32, i32
  }
  func.func @transform_7(%arg0: i32) -> (i32, i32) {
    %c0_i32 = arith.constant 0 : i32
    %c0_i32_0 = arith.constant 0 : i32
    %c0_i32_1 = arith.constant 0 : i32
    return %c0_i32, %c0_i32_0 : i32, i32
  }
  func.func @transform_8(%arg0: i32) -> (i32, i32) {
    %c0_i32 = arith.constant 0 : i32
    %c0_i32_0 = arith.constant 0 : i32
    %c0_i32_1 = arith.constant 0 : i32
    return %c0_i32, %c0_i32_0 : i32, i32
  }
  func.func @transform_9(%arg0: i32) -> (i32, i32) {
    %c0_i32 = arith.constant 0 : i32
    %c0_i32_0 = arith.constant 0 : i32
    return %arg0, %c0_i32 : i32, i32
  }
}

</mosaic_0001>

<bundles_post_ra>
// kernel: tpu_custom_call.1
= control target key start
LH: loop header
LB: loop body
LE: loop exit
PB: predicated region body
PF: predicated region fallthrough
CT: control target
= control target key end

     0   :  { %14 = vsyncpa [#allocation3], 0  ;;  %s696_s0 = inlined_call_operand.hbm [shape: bf16[8,32], index: 0, kind: input, shape index: {}]   ;;  %s697_s1 = inlined_call_operand.hbm [shape: bf16[8,32], index: 1, kind: input, shape index: {}]   ;;  %s698_s2 = inlined_call_operand.vmem [shape: bf16[32,32], index: 2, kind: input, shape index: {}]   ;;  %s699_s3 = inlined_call_operand.vmem [shape: f32[1,32], index: 3, kind: input, shape index: {}]   ;;  %s700_s4 = inlined_call_operand.vmem [shape: bf16[32,32], index: 4, kind: input, shape index: {}]   ;;  %s701_s5 = inlined_call_operand.vmem [shape: bf16[32,64], index: 5, kind: input, shape index: {}]   ;;  %s702_s6 = inlined_call_operand.vmem [shape: f32[1,64], index: 6, kind: input, shape index: {}]   ;;  %s703_s7 = inlined_call_operand.vmem [shape: bf16[64,16], index: 7, kind: input, shape index: {}]   ;;  %s704_s8 = inlined_call_operand.vmem [shape: f32[1,16], index: 8, kind: input, shape index: {}]   ;;  %s705_s9 = inlined_call_operand.hbm [shape: f32[8,16], index: 9, kind: output, shape index: {}]  }
   0x1   :  { %15 = vsyncpa [#allocation6], 0 }
   0x2   :  { %16 = vsyncpa [#allocation4], 0  ;;  %s543_s30 = smov [#allocation2]   ;;  %s544_s11 = smov [#allocation5]  }
   0x3   :  { %s23_s10 = sshll.u32 %s543_s30, 4  ;;  %s33_s12 = sshll.u32 %s544_s11, 4  ;;  %s24_s10 = int_to_ptr.vmem [resolvable:$true] %s23_s10  ;;  %s34_s12 = int_to_ptr.vmem [resolvable:$true] %s33_s12 }
   0x4   :  { %s471_s15 = scalar_lea.hbm %s696_s0, 64 }
   0x5   :  { %p472_p0 = scmp.ne.s32.totalorder %s696_s0, %s471_s15  ;;  %p475_p1 = scmp.lt.u32.totalorder %s471_s15, %s696_s0 }
   0x7   :  { %p477_p2 = pnand %p475_p1, %p472_p0 }
   0x9   :  { %480 = shalt.err (!%p477_p2)
}
   0xa   :  { %s481_s20 = scalar_lea.vmem %s24_s10, 64  ;;  %p486_p4 = scmp.lt.s32.totalorder %s24_s10, %s24_s10 }
   0xb   :  { %p482_p3 = scmp.ne.s32.totalorder %s24_s10, %s481_s20  ;;  %p487_p5 = scmp.lt.s32.totalorder %s481_s20, %s481_s20 }
   0xd   :  { %p488_p6 = por %p487_p5, %p486_p4 }
   0xf   :  { %p489_p7 = pnand %p488_p6, %p482_p3 }
  0x11   :  { %492 = shalt.err (!%p489_p7)
}
  0x12   :  { %26 = dma.hbm_to_vmem [thread:$0]  %s696_s0, 64, %s24_s10, [#allocation3]  }
  0x13   :  { %s493_s25 = scalar_lea.hbm %s697_s1, 64 }
  0x14   :  { %p494_p8 = scmp.ne.s32.totalorder %s697_s1, %s493_s25  ;;  %p497_p9 = scmp.lt.u32.totalorder %s493_s25, %s697_s1 }
  0x16   :  { %p499_p10 = pnand %p497_p9, %p494_p8 }
  0x18   :  { %502 = shalt.err (!%p499_p10)
}
  0x19   :  { %s503_s30 = scalar_lea.vmem %s34_s12, 64  ;;  %p508_p12 = scmp.lt.s32.totalorder %s34_s12, %s34_s12 }
  0x1a   :  { %p504_p11 = scmp.ne.s32.totalorder %s34_s12, %s503_s30  ;;  %p509_p13 = scmp.lt.s32.totalorder %s503_s30, %s503_s30 }
  0x1c   :  { %p510_p0 = por %p509_p13, %p508_p12 }
  0x1e   :  { %p511_p1 = pnand %p510_p0, %p504_p11 }
  0x20   :  { %514 = shalt.err (!%p511_p1)
}
  0x21   :  { %36 = dma.hbm_to_vmem [thread:$0]  %s697_s1, 64, %s34_s12, [#allocation6]  }
  0x22   :  { %537 = dma.done.wait [#allocation3], 64  }
  0x23   :  { %538 = vsyncadd [#allocation3], 4294967232 }
  0x24   :  { %539 = dma.done.wait [#allocation6], 64  }
  0x25   :  { %540 = vsyncadd [#allocation6], 4294967232  ;;  %vm63_vm0 = vcmask 261120   ;;  %v58_v0 = vld [vmem:[#allocation2] sm:$0xf]  ;;  %v545_v10 = vmov 0.0  }
  0x26   :  { %v60_v1 = vld [vmem:[#allocation5] sm:$0xf]  ;;  %v59_v2 = vunpack.c.l.bf16 %v58_v0  ;;  %414 = vmatprep.subr.bf16.mxu0 %v545_v10  ;;  %vm546_vm1 = vmmov 0   ;;  %v456_v11 = vld [vmem:[%s698_s2 + $0x8] sm:$0xff]   ;;  %422 = vmatprep.subr.bf16.mxu1 %v545_v10  ;;  %v382_v23 = vld [vmem:[%s699_s3] ss:$0 sm:$0xff] }
  0x27   :  { %v61_v3 = vunpack.c.l.bf16 %v60_v1  ;;  %v455_v9 = vld [vmem:[%s698_s2] sm:$0xff]   ;;  %418 = vmatprep.mubr.msk.bf16.mxu0 %vm546_vm1, %v545_v10  ;;  %426 = vmatprep.mubr.msk.bf16.mxu1 %vm546_vm1, %v545_v10  ;;  %v458_v21 = vld [vmem:[%s700_s4 + $0x8] sm:$0xff]   ;;  %v463_v44 = vld [vmem:[%s703_s7 + $0x10] sm:$0xff]   ;;  %vm320_vm2 = vcmask 523264   ;;  %s547_s10 = smov [#allocation7]   ;;  %vm364_vm3 = vcmask 130048  }
  0x28   :  { %v62_v4 = vmul.f32 %v59_v2, %v59_v2  ;;  %415 = vmatpush3.bf16.msra.mxu0 %v455_v9  ;;  %v457_v20 = vld [vmem:[%s700_s4] sm:$0xff]   ;;  %v460_v35 = vld [vmem:[%s701_s5 + $0x8] sm:$0xff]   ;;  %v464_v45 = vld [vmem:[%s703_s7 + $0x18] sm:$0xff]  }
  0x29   :  { %v67_v5 = vmul.f32 %v61_v3, %v61_v3  ;;  %v75_v6 = vmul.f32 %v61_v3, %v59_v2  ;;  %416 = vmatprep.subr.bf16.mxu0 %v545_v10  ;;  %423 = vmatpush3.bf16.msra.mxu1 %v457_v20  ;;  %v459_v22 = vld [vmem:[%s701_s5] sm:$0xff]   ;;  %v462_v37 = vld [vmem:[%s703_s7 + $0x8] sm:$0xff]  }
  0x2a   :  { %v64_v7 = vsel %vm63_vm0, %v62_v4, 0.0  ;;  %424 = vmatprep.subr.bf16.mxu1 %v545_v10  ;;  %v461_v36 = vld [vmem:[%s703_s7] sm:$0xff]   ;;  %s372_s7 = sshll.u32 %s547_s10, 4  ;;  %s373_s7 = int_to_ptr.vmem [resolvable:$true] %s372_s7 }
  0x2b   :  { %65 = vadd.xlane.f32.xlu0 %v64_v7  ;;  %v68_v8 = vsel %vm63_vm0, %v67_v5, 0.0  ;;  %v390_v46 = vld [vmem:[%s702_s6] ss:$0 sm:$0xff]  ;;  %s515_s6 = scalar_lea.vmem %s373_s7, 128  ;;  %p520_p3 = scmp.lt.s32.totalorder %s373_s7, %s373_s7 }
  0x2c   :  { %417 = vmatpush3.bf16.msra.mxu0 %v456_v11  ;;  %v394_v54 = vld [vmem:[%s704_s8] ss:$0 sm:$0xff]  ;;  %p516_p2 = scmp.ne.s32.totalorder %s373_s7, %s515_s6  ;;  %p521_p4 = scmp.lt.s32.totalorder %s515_s6, %s515_s6 }
  0x2d   :  { %430 = vmatprep.subr.bf16.mxu0 %v545_v10  ;;  %425 = vmatpush3.bf16.msra.mxu1 %v458_v21 }
  0x2e   :  { %438 = vmatprep.subr.bf16.mxu1 %v545_v10  ;;  %p522_p5 = por %p521_p4, %p520_p3 }
  0x2f   :  { %69 = vadd.xlane.f32.xlu0 %v68_v8 }
  0x30   :  { %p523_p6 = pnand %p522_p5, %p516_p2 }
  0xb8   :  { %v66_v12 = vpop.xlane.xlu0 %65 }
  0xb9   :  { %v71_v14 = vmax.f32 %v66_v12, 1e-24 }
  0xbc   :  { %v70_v13 = vpop.xlane.xlu0 %69 }
  0xbd   :  { %v72_v15 = vmax.f32 %v70_v13, 1e-24 }
  0xbf   :  { %v73_v16 = vmul.f32 %v72_v15, %v71_v14 }
  0xc1   :  { %465 = vrsqrt.f32 %v73_v16 }
  0xcb   :  { %v466_v17 = vpop.eup %465 }
  0xcc   :  { %v76_v18 = vmul.f32 %v466_v17, %v75_v6 }
  0xce   :  { %v77_v19 = vpack.c.bf16 %v76_v18, %v76_v18 }
  0xd0   :  { %419 = vmatmul.mubr.msk.bf16.vlgmr.msra.gmra.mrb[0].mxu0 %vm63_vm0, %v77_v19 }
  0xd1   :  { %434 = vmatprep.mubr.msk.bf16.mxu0 %vm546_vm1, %v545_v10  ;;  %431 = vmatpush3.bf16.msra.mxu0 %v459_v22 }
  0xd2   :  { %432 = vmatprep.subr.bf16.mxu0 %v545_v10 }
  0xd5   :  { %433 = vmatpush3.bf16.msra.mxu0 %v460_v35 }
 0x1a3   :  { %v138_v24 = vpop.f32.mrb[0].mxu0 }
 0x1a4   :  { %v139_v25 = vadd.f32 %v382_v23, %v138_v24  ;;  %v420_v26 = vpop.f32.mrb[1].mxu0 }
 0x1a5   :  { %v141_v27 = vpop.f32.mrb[2].mxu0 }
 0x1a6   :  { %v386_v28 = vmul.f32 -1.442695, %v139_v25  ;;  %v421_v29 = vpop.f32.mrb[3].mxu0 }
 0x1a8   :  { %467 = vpow2.f32 %v386_v28 }
 0x1b2   :  { %v468_v30 = vpop.eup %467 }
 0x1b3   :  { %v147_v31 = vadd.f32 1.0, %v468_v30 }
 0x1b5   :  { %469 = vrcp.f32 %v147_v31 }
 0x1bf   :  { %v470_v32 = vpop.eup %469 }
 0x1c0   :  { %v150_v33 = vmul.f32 %v470_v32, %v76_v18 }
 0x1c2   :  { %v151_v34 = vpack.c.bf16 %v150_v33, %v150_v33 }
 0x1c4   :  { %427 = vmatmul.mubr.msk.bf16.vlgmr.msra.gmra.mrb[0].mxu1 %vm63_vm0, %v151_v34 }
 0x1c5   :  { %446 = vmatprep.mubr.msk.bf16.mxu1 %vm546_vm1, %v545_v10  ;;  %439 = vmatpush3.bf16.msra.mxu1 %v461_v36 }
 0x1c6   :  { %440 = vmatprep.subr.bf16.mxu1 %v545_v10 }
 0x1c9   :  { %441 = vmatpush3.bf16.msra.mxu1 %v462_v37 }
 0x1ca   :  { %442 = vmatprep.subr.bf16.mxu1 %v545_v10 }
 0x1cd   :  { %443 = vmatpush3.bf16.msra.mxu1 %v463_v44 }
 0x1ce   :  { %444 = vmatprep.subr.bf16.mxu1 %v545_v10 }
 0x1d1   :  { %445 = vmatpush3.bf16.msra.mxu1 %v464_v45 }
 0x297   :  { %v205_v38 = vpop.f32.mrb[0].mxu1 }
 0x298   :  { %v211_v39 = vmax.f32 %v205_v38, 0.0  ;;  %v428_v40 = vpop.f32.mrb[1].mxu1 }
 0x299   :  { %v208_v41 = vpop.f32.mrb[2].mxu1 }
 0x29a   :  { %v212_v42 = vpack.c.bf16 %v211_v39, %v211_v39  ;;  %v429_v43 = vpop.f32.mrb[3].mxu1 }
 0x29c   :  { %435 = vmatmul.mubr.msk.bf16.vlgmr.msra.gmra.mrb[4].mxu0 %vm63_vm0, %v212_v42 }
 0x36f   :  { %v273_v47 = vpop.f32.mrb[4].mxu0 }
 0x370   :  { %v274_v48 = vadd.f32 %v390_v46, %v273_v47  ;;  %v436_v49 = vpop.f32.mrb[5].mxu0 }
 0x371   :  { %v276_v50 = vpop.f32.mrb[6].mxu0 }
 0x372   :  { %v279_v51 = vmax.f32 %v274_v48, 0.0  ;;  %v437_v52 = vpop.f32.mrb[7].mxu0 }
 0x374   :  { %v280_v53 = vpack.c.bf16 %v279_v51, %v279_v51 }
 0x376   :  { %447 = vmatmul.mubr.msk.bf16.vlgmr.msra.gmra.mrb[4].mxu1 %vm320_vm2, %v280_v53 }
 0x449   :  { %v358_v55 = vpop.f32.mrb[4].mxu1 }
 0x44a   :  { %v359_v56 = vadd.f32 %v394_v54, %v358_v55  ;;  %v448_v57 = vpop.f32.mrb[5].mxu1 }
 0x44b   :  { %v361_v58 = vpop.f32.mrb[6].mxu1 }
 0x44c   :  { %v449_v59 = vpop.f32.mrb[7].mxu1  ;;  %365 = vst.msk [vmem:[#allocation7] sm:$0xff] %vm364_vm3, %v359_v56 }
 0x44d   :  { %526 = shalt.err (!%p523_p6)
}
 0x44e   :  { %s527_s8 = scalar_lea.hbm %s705_s9, 128 }
 0x44f   :  { %p528_p7 = scmp.ne.s32.totalorder %s705_s9, %s527_s8  ;;  %p531_p8 = scmp.lt.u32.totalorder %s527_s8, %s705_s9 }
 0x451   :  { %p533_p9 = pnand %p531_p8, %p528_p7 }
 0x453   :  { %536 = shalt.err (!%p533_p9)
}
 0x454   :  { %375 = dma.vmem_to_hbm [thread:$0]  %s373_s7, 128, %s705_s9, [#allocation4]  }
 0x455   :  { %541 = dma.done.wait [#allocation4], 128  }
 0x456   :  { %542 = vsyncadd [#allocation4], 4294967168 }
 0x457   :  { %379 = vsyncpa [#allocation3], 1 }
 0x458   :  { %380 = vsyncpa [#allocation6], 1 }
 0x459   :  { %381 = vsyncpa [#allocation4], 1 }

// kernel: tpu_custom_call.1
= control target key start
LH: loop header
LB: loop body
LE: loop exit
PB: predicated region body
PF: predicated region fallthrough
CT: control target
= control target key end

     0   :  { %14 = vsyncpa [#allocation3], 0  ;;  %s696_s0 = inlined_call_operand.hbm [shape: bf16[8,32], index: 0, kind: input, shape index: {}]   ;;  %s697_s1 = inlined_call_operand.hbm [shape: bf16[8,32], index: 1, kind: input, shape index: {}]   ;;  %s698_s2 = inlined_call_operand.vmem [shape: bf16[32,32], index: 2, kind: input, shape index: {}]   ;;  %s699_s3 = inlined_call_operand.vmem [shape: f32[1,32], index: 3, kind: input, shape index: {}]   ;;  %s700_s4 = inlined_call_operand.vmem [shape: bf16[32,32], index: 4, kind: input, shape index: {}]   ;;  %s701_s5 = inlined_call_operand.vmem [shape: bf16[32,64], index: 5, kind: input, shape index: {}]   ;;  %s702_s6 = inlined_call_operand.vmem [shape: f32[1,64], index: 6, kind: input, shape index: {}]   ;;  %s703_s7 = inlined_call_operand.vmem [shape: bf16[64,16], index: 7, kind: input, shape index: {}]   ;;  %s704_s8 = inlined_call_operand.vmem [shape: f32[1,16], index: 8, kind: input, shape index: {}]   ;;  %s705_s9 = inlined_call_operand.hbm [shape: f32[8,16], index: 9, kind: output, shape index: {}]  }
   0x1   :  { %15 = vsyncpa [#allocation6], 0 }
   0x2   :  { %16 = vsyncpa [#allocation4], 0  ;;  %s543_s30 = smov [#allocation2]   ;;  %s544_s11 = smov [#allocation5]  }
   0x3   :  { %s23_s10 = sshll.u32 %s543_s30, 4  ;;  %s33_s12 = sshll.u32 %s544_s11, 4  ;;  %s24_s10 = int_to_ptr.vmem [resolvable:$true] %s23_s10  ;;  %s34_s12 = int_to_ptr.vmem [resolvable:$true] %s33_s12 }
   0x4   :  { %s471_s15 = scalar_lea.hbm %s696_s0, 64 }
   0x5   :  { %p472_p0 = scmp.ne.s32.totalorder %s696_s0, %s471_s15  ;;  %p475_p1 = scmp.lt.u32.totalorder %s471_s15, %s696_s0 }
   0x7   :  { %p477_p2 = pnand %p475_p1, %p472_p0 }
   0x9   :  { %480 = shalt.err (!%p477_p2)
}
   0xa   :  { %s481_s20 = scalar_lea.vmem %s24_s10, 64  ;;  %p486_p4 = scmp.lt.s32.totalorder %s24_s10, %s24_s10 }
   0xb   :  { %p482_p3 = scmp.ne.s32.totalorder %s24_s10, %s481_s20  ;;  %p487_p5 = scmp.lt.s32.totalorder %s481_s20, %s481_s20 }
   0xd   :  { %p488_p6 = por %p487_p5, %p486_p4 }
   0xf   :  { %p489_p7 = pnand %p488_p6, %p482_p3 }
  0x11   :  { %492 = shalt.err (!%p489_p7)
}
  0x12   :  { %26 = dma.hbm_to_vmem [thread:$0]  %s696_s0, 64, %s24_s10, [#allocation3]  }
  0x13   :  { %s493_s25 = scalar_lea.hbm %s697_s1, 64 }
  0x14   :  { %p494_p8 = scmp.ne.s32.totalorder %s697_s1, %s493_s25  ;;  %p497_p9 = scmp.lt.u32.totalorder %s493_s25, %s697_s1 }
  0x16   :  { %p499_p10 = pnand %p497_p9, %p494_p8 }
  0x18   :  { %502 = shalt.err (!%p499_p10)
}
  0x19   :  { %s503_s30 = scalar_lea.vmem %s34_s12, 64  ;;  %p508_p12 = scmp.lt.s32.totalorder %s34_s12, %s34_s12 }
  0x1a   :  { %p504_p11 = scmp.ne.s32.totalorder %s34_s12, %s503_s30  ;;  %p509_p13 = scmp.lt.s32.totalorder %s503_s30, %s503_s30 }
  0x1c   :  { %p510_p0 = por %p509_p13, %p508_p12 }
  0x1e   :  { %p511_p1 = pnand %p510_p0, %p504_p11 }
  0x20   :  { %514 = shalt.err (!%p511_p1)
}
  0x21   :  { %36 = dma.hbm_to_vmem [thread:$0]  %s697_s1, 64, %s34_s12, [#allocation6]  }
  0x22   :  { %537 = dma.done.wait [#allocation3], 64  }
  0x23   :  { %538 = vsyncadd [#allocation3], 4294967232 }
  0x24   :  { %539 = dma.done.wait [#allocation6], 64  }
  0x25   :  { %540 = vsyncadd [#allocation6], 4294967232  ;;  %vm63_vm0 = vcmask 261120   ;;  %v58_v0 = vld [vmem:[#allocation2] sm:$0xf]  ;;  %v545_v10 = vmov 0.0  }
  0x26   :  { %v60_v1 = vld [vmem:[#allocation5] sm:$0xf]  ;;  %v59_v2 = vunpack.c.l.bf16 %v58_v0  ;;  %414 = vmatprep.subr.bf16.mxu0 %v545_v10  ;;  %vm546_vm1 = vmmov 0   ;;  %v456_v11 = vld [vmem:[%s698_s2 + $0x8] sm:$0xff]   ;;  %422 = vmatprep.subr.bf16.mxu1 %v545_v10  ;;  %v382_v23 = vld [vmem:[%s699_s3] ss:$0 sm:$0xff] }
  0x27   :  { %v61_v3 = vunpack.c.l.bf16 %v60_v1  ;;  %v455_v9 = vld [vmem:[%s698_s2] sm:$0xff]   ;;  %418 = vmatprep.mubr.msk.bf16.mxu0 %vm546_vm1, %v545_v10  ;;  %426 = vmatprep.mubr.msk.bf16.mxu1 %vm546_vm1, %v545_v10  ;;  %v458_v21 = vld [vmem:[%s700_s4 + $0x8] sm:$0xff]   ;;  %v463_v44 = vld [vmem:[%s703_s7 + $0x10] sm:$0xff]   ;;  %vm320_vm2 = vcmask 523264   ;;  %s547_s10 = smov [#allocation7]   ;;  %vm364_vm3 = vcmask 130048  }
  0x28   :  { %v62_v4 = vmul.f32 %v59_v2, %v59_v2  ;;  %415 = vmatpush3.bf16.msra.mxu0 %v455_v9  ;;  %v457_v20 = vld [vmem:[%s700_s4] sm:$0xff]   ;;  %v460_v35 = vld [vmem:[%s701_s5 + $0x8] sm:$0xff]   ;;  %v464_v45 = vld [vmem:[%s703_s7 + $0x18] sm:$0xff]  }
  0x29   :  { %v67_v5 = vmul.f32 %v61_v3, %v61_v3  ;;  %v75_v6 = vmul.f32 %v61_v3, %v59_v2  ;;  %416 = vmatprep.subr.bf16.mxu0 %v545_v10  ;;  %423 = vmatpush3.bf16.msra.mxu1 %v457_v20  ;;  %v459_v22 = vld [vmem:[%s701_s5] sm:$0xff]   ;;  %v462_v37 = vld [vmem:[%s703_s7 + $0x8] sm:$0xff]  }
  0x2a   :  { %v64_v7 = vsel %vm63_vm0, %v62_v4, 0.0  ;;  %424 = vmatprep.subr.bf16.mxu1 %v545_v10  ;;  %v461_v36 = vld [vmem:[%s703_s7] sm:$0xff]   ;;  %s372_s7 = sshll.u32 %s547_s10, 4  ;;  %s373_s7 = int_to_ptr.vmem [resolvable:$true] %s372_s7 }
  0x2b   :  { %65 = vadd.xlane.f32.xlu0 %v64_v7  ;;  %v68_v8 = vsel %vm63_vm0, %v67_v5, 0.0  ;;  %v390_v46 = vld [vmem:[%s702_s6] ss:$0 sm:$0xff]  ;;  %s515_s6 = scalar_lea.vmem %s373_s7, 128  ;;  %p520_p3 = scmp.lt.s32.totalorder %s373_s7, %s373_s7 }
  0x2c   :  { %417 = vmatpush3.bf16.msra.mxu0 %v456_v11  ;;  %v394_v54 = vld [vmem:[%s704_s8] ss:$0 sm:$0xff]  ;;  %p516_p2 = scmp.ne.s32.totalorder %s373_s7, %s515_s6  ;;  %p521_p4 = scmp.lt.s32.totalorder %s515_s6, %s515_s6 }
  0x2d   :  { %430 = vmatprep.subr.bf16.mxu0 %v545_v10  ;;  %425 = vmatpush3.bf16.msra.mxu1 %v458_v21 }
  0x2e   :  { %438 = vmatprep.subr.bf16.mxu1 %v545_v10  ;;  %p522_p5 = por %p521_p4, %p520_p3 }
  0x2f   :  { %69 = vadd.xlane.f32.xlu0 %v68_v8 }
  0x30   :  { %p523_p6 = pnand %p522_p5, %p516_p2 }
  0xb8   :  { %v66_v12 = vpop.xlane.xlu0 %65 }
  0xb9   :  { %v71_v14 = vmax.f32 %v66_v12, 1e-24 }
  0xbc   :  { %v70_v13 = vpop.xlane.xlu0 %69 }
  0xbd   :  { %v72_v15 = vmax.f32 %v70_v13, 1e-24 }
  0xbf   :  { %v73_v16 = vmul.f32 %v72_v15, %v71_v14 }
  0xc1   :  { %465 = vrsqrt.f32 %v73_v16 }
  0xcb   :  { %v466_v17 = vpop.eup %465 }
  0xcc   :  { %v76_v18 = vmul.f32 %v466_v17, %v75_v6 }
  0xce   :  { %v77_v19 = vpack.c.bf16 %v76_v18, %v76_v18 }
  0xd0   :  { %419 = vmatmul.mubr.msk.bf16.vlgmr.msra.gmra.mrb[0].mxu0 %vm63_vm0, %v77_v19 }
  0xd1   :  { %434 = vmatprep.mubr.msk.bf16.mxu0 %vm546_vm1, %v545_v10  ;;  %431 = vmatpush3.bf16.msra.mxu0 %v459_v22 }
  0xd2   :  { %432 = vmatprep.subr.bf16.mxu0 %v545_v10 }
  0xd5   :  { %433 = vmatpush3.bf16.msra.mxu0 %v460_v35 }
 0x1a3   :  { %v138_v24 = vpop.f32.mrb[0].mxu0 }
 0x1a4   :  { %v139_v25 = vadd.f32 %v382_v23, %v138_v24  ;;  %v420_v26 = vpop.f32.mrb[1].mxu0 }
 0x1a5   :  { %v141_v27 = vpop.f32.mrb[2].mxu0 }
 0x1a6   :  { %v386_v28 = vmul.f32 -1.442695, %v139_v25  ;;  %v421_v29 = vpop.f32.mrb[3].mxu0 }
 0x1a8   :  { %467 = vpow2.f32 %v386_v28 }
 0x1b2   :  { %v468_v30 = vpop.eup %467 }
 0x1b3   :  { %v147_v31 = vadd.f32 1.0, %v468_v30 }
 0x1b5   :  { %469 = vrcp.f32 %v147_v31 }
 0x1bf   :  { %v470_v32 = vpop.eup %469 }
 0x1c0   :  { %v150_v33 = vmul.f32 %v470_v32, %v76_v18 }
 0x1c2   :  { %v151_v34 = vpack.c.bf16 %v150_v33, %v150_v33 }
 0x1c4   :  { %427 = vmatmul.mubr.msk.bf16.vlgmr.msra.gmra.mrb[0].mxu1 %vm63_vm0, %v151_v34 }
 0x1c5   :  { %446 = vmatprep.mubr.msk.bf16.mxu1 %vm546_vm1, %v545_v10  ;;  %439 = vmatpush3.bf16.msra.mxu1 %v461_v36 }
 0x1c6   :  { %440 = vmatprep.subr.bf16.mxu1 %v545_v10 }
 0x1c9   :  { %441 = vmatpush3.bf16.msra.mxu1 %v462_v37 }
 0x1ca   :  { %442 = vmatprep.subr.bf16.mxu1 %v545_v10 }
 0x1cd   :  { %443 = vmatpush3.bf16.msra.mxu1 %v463_v44 }
 0x1ce   :  { %444 = vmatprep.subr.bf16.mxu1 %v545_v10 }
 0x1d1   :  { %445 = vmatpush3.bf16.msra.mxu1 %v464_v45 }
 0x297   :  { %v205_v38 = vpop.f32.mrb[0].mxu1 }
 0x298   :  { %v211_v39 = vmax.f32 %v205_v38, 0.0  ;;  %v428_v40 = vpop.f32.mrb[1].mxu1 }
 0x299   :  { %v208_v41 = vpop.f32.mrb[2].mxu1 }
 0x29a   :  { %v212_v42 = vpack.c.bf16 %v211_v39, %v211_v39  ;;  %v429_v43 = vpop.f32.mrb[3].mxu1 }
 0x29c   :  { %435 = vmatmul.mubr.msk.bf16.vlgmr.msra.gmra.mrb[4].mxu0 %vm63_vm0, %v212_v42 }
 0x36f   :  { %v273_v47 = vpop.f32.mrb[4].mxu0 }
 0x370   :  { %v274_v48 = vadd.f32 %v390_v46, %v273_v47  ;;  %v436_v49 = vpop.f32.mrb[5].mxu0 }
 0x371   :  { %v276_v50 = vpop.f32.mrb[6].mxu0 }
 0x372   :  { %v279_v51 = vmax.f32 %v274_v48, 0.0  ;;  %v437_v52 = vpop.f32.mrb[7].mxu0 }
 0x374   :  { %v280_v53 = vpack.c.bf16 %v279_v51, %v279_v51 }
 0x376   :  { %447 = vmatmul.mubr.msk.bf16.vlgmr.msra.gmra.mrb[4].mxu1 %vm320_vm2, %v280_v53 }
 0x449   :  { %v358_v55 = vpop.f32.mrb[4].mxu1 }
 0x44a   :  { %v359_v56 = vadd.f32 %v394_v54, %v358_v55  ;;  %v448_v57 = vpop.f32.mrb[5].mxu1 }
 0x44b   :  { %v361_v58 = vpop.f32.mrb[6].mxu1 }
 0x44c   :  { %v449_v59 = vpop.f32.mrb[7].mxu1  ;;  %365 = vst.msk [vmem:[#allocation7] sm:$0xff] %vm364_vm3, %v359_v56 }
 0x44d   :  { %526 = shalt.err (!%p523_p6)
}
 0x44e   :  { %s527_s8 = scalar_lea.hbm %s705_s9, 128 }
 0x44f   :  { %p528_p7 = scmp.ne.s32.totalorder %s705_s9, %s527_s8  ;;  %p531_p8 = scmp.lt.u32.totalorder %s527_s8, %s705_s9 }
 0x451   :  { %p533_p9 = pnand %p531_p8, %p528_p7 }
 0x453   :  { %536 = shalt.err (!%p533_p9)
}
 0x454   :  { %375 = dma.vmem_to_hbm [thread:$0]  %s373_s7, 128, %s705_s9, [#allocation4]  }
 0x455   :  { %541 = dma.done.wait [#allocation4], 128  }
 0x456   :  { %542 = vsyncadd [#allocation4], 4294967168 }
 0x457   :  { %379 = vsyncpa [#allocation3], 1 }
 0x458   :  { %380 = vsyncpa [#allocation6], 1 }
 0x459   :  { %381 = vsyncpa [#allocation4], 1 }

</bundles_post_ra>
